<compile_context>
chip_gen: v5e
topology: v5e:2x2
jax: 0.10.0
libtpu: 0.0.40
codegen_flags: <defaults>
</compile_context>

<pallas_src>
import functools

import jax
import jax.numpy as jnp
from jax.experimental import pallas as pl
from jax.experimental.pallas import tpu as pltpu


# --------------------------------------------------------------------------
# Conv2d (KxK, stride 1, 'same' padding), bf16 operands, f32 accumulation.
# Supports a list of inputs (virtual channel concat) -> one reduction grid
# axis spanning all inputs' Cin tiles.  grid = (N, Cout tiles, Cin tiles).
# --------------------------------------------------------------------------
def _conv_multi_kernel(*refs, K, H, W, n_inputs, bounds, n_total, chunk,
                       apply_relu):
    x_refs = refs[:n_inputs]
    w_refs = refs[n_inputs:2 * n_inputs]
    b_ref = refs[2 * n_inputs]
    o_ref = refs[2 * n_inputs + 1]
    acc_ref = refs[2 * n_inputs + 2]
    i = pl.program_id(2)

    @pl.when(i == 0)
    def _():
        acc_ref[...] = jnp.zeros_like(acc_ref)

    def accumulate(x_ref, w_ref):
        cin = x_ref.shape[-1]
        co = acc_ref.shape[-1]
        for h0 in range(0, H, chunk):
            hc = min(chunk, H - h0)
            part = jnp.zeros((hc * W, co), jnp.float32)
            for dy in range(K):
                for dx in range(K):
                    patch = x_ref[0, h0 + dy:h0 + dy + hc, dx:dx + W, :]
                    patch = patch.reshape(hc * W, cin).astype(jnp.bfloat16)
                    part = part + jnp.dot(patch, w_ref[dy, dx],
                                          preferred_element_type=jnp.float32)
            acc_ref[h0:h0 + hc] += part.reshape(hc, W, co)

    for t in range(n_inputs):
        lo, hi = bounds[t]
        if n_inputs == 1:
            accumulate(x_refs[t], w_refs[t])
        else:
            @pl.when((i >= lo) & (i < hi))
            def _(t=t):
                accumulate(x_refs[t], w_refs[t])

    @pl.when(i == n_total - 1)
    def _():
        out = acc_ref[...] + b_ref[...][None, None, :]
        if apply_relu:
            out = jnp.maximum(out, 0.0)
        o_ref[0] = out.astype(o_ref.dtype)


def conv2d_multi(xs, ws, b, *, relu=False):
    """Conv over the (virtual) channel-concat of xs; ws are the matching
    channel slabs of the full weight, shape (K, K, Ci, Cout) each."""
    N, H, W, _ = xs[0].shape
    K = ws[0].shape[0]
    Cout = ws[0].shape[-1]
    pad = (K - 1) // 2
    Hp, Wp = H + 2 * pad, W + 2 * pad
    xps = [jnp.pad(x, ((0, 0), (pad, pad), (pad, pad), (0, 0))) if pad else x
           for x in xs]

    cks, ncs, bounds = [], [], []
    start = 0
    for x in xs:
        ci = x.shape[-1]
        ck = ci if ci <= 512 else 512
        assert ci % ck == 0
        nc = ci // ck
        cks.append(ck)
        ncs.append(nc)
        bounds.append((start, start + nc))
        start += nc
    n_total = start

    co = 256 if Cout >= 256 else Cout
    assert Cout % co == 0
    nco = Cout // co
    chunk = H if H * W <= 1024 else max(1, 1024 // W)
    n_inputs = len(xs)

    in_specs = []
    for t in range(n_inputs):
        lo, nt = bounds[t][0], ncs[t]
        in_specs.append(pl.BlockSpec(
            (1, Hp, Wp, cks[t]),
            lambda n, j, i, lo=lo, nt=nt: (n, 0, 0, jnp.clip(i - lo, 0, nt - 1))))
    for t in range(n_inputs):
        lo, nt = bounds[t][0], ncs[t]
        in_specs.append(pl.BlockSpec(
            (K, K, cks[t], co),
            lambda n, j, i, lo=lo, nt=nt: (0, 0, jnp.clip(i - lo, 0, nt - 1), j)))
    in_specs.append(pl.BlockSpec((co,), lambda n, j, i: (j,)))

    kern = functools.partial(
        _conv_multi_kernel, K=K, H=H, W=W, n_inputs=n_inputs,
        bounds=tuple(bounds), n_total=n_total, chunk=chunk, apply_relu=relu)

    return pl.pallas_call(
        kern,
        out_shape=jax.ShapeDtypeStruct((N, H, W, Cout), jnp.float32),
        grid=(N, nco, n_total),
        in_specs=in_specs,
        out_specs=pl.BlockSpec((1, H, W, co), lambda n, j, i: (n, 0, 0, j)),
        scratch_shapes=[pltpu.VMEM((H, W, co), jnp.float32)],
        compiler_params=pltpu.CompilerParams(
            dimension_semantics=("parallel", "parallel", "arbitrary")),
    )(*xps, *[w.astype(jnp.bfloat16) for w in ws], b)


# --------------------------------------------------------------------------
# Bilinear 2x upsample (align_corners=True, nn.UpsamplingBilinear2d).
# Separable: static per-output-row blend of 2 source rows (H interp), then a
# single (Wo, W) x (W, C) matmul per output row (W interp).
# --------------------------------------------------------------------------
def _interp_matrix(n_in, n_out):
    if n_in == 1:
        return jnp.ones((n_out, 1), jnp.float32)
    src = jnp.arange(n_out, dtype=jnp.float32) * (n_in - 1) / (n_out - 1)
    lo = jnp.clip(jnp.floor(src).astype(jnp.int32), 0, n_in - 2)
    frac = src - lo.astype(jnp.float32)
    m = jnp.zeros((n_out, n_in), jnp.float32)
    idx = jnp.arange(n_out)
    m = m.at[idx, lo].set(1.0 - frac)
    m = m.at[idx, lo + 1].add(frac)
    return m


def _upsample_kernel(x_ref, c_ref, o_ref, *, H, Ho):
    for ho in range(Ho):
        if Ho > 1 and H > 1:
            src = ho * (H - 1) / (Ho - 1)
        else:
            src = 0.0
        lo = min(int(src), H - 2) if H > 1 else 0
        fr = src - lo
        row = x_ref[0, lo]
        if fr > 1e-9:
            row = (1.0 - fr) * row + fr * x_ref[0, lo + 1]
        o_ref[0, ho] = jnp.dot(c_ref[...], row,
                               preferred_element_type=jnp.float32)


def upsample_bilinear_2x(x):
    N, H, W, C = x.shape
    Ho, Wo = 2 * H, 2 * W
    cmat = _interp_matrix(W, Wo)      # (Wo, W)
    kern = functools.partial(_upsample_kernel, H=H, Ho=Ho)
    return pl.pallas_call(
        kern,
        out_shape=jax.ShapeDtypeStruct((N, Ho, Wo, C), jnp.float32),
        grid=(N,),
        in_specs=[pl.BlockSpec((1, H, W, C), lambda n: (n, 0, 0, 0)),
                  pl.BlockSpec((Wo, W), lambda n: (0, 0))],
        out_specs=pl.BlockSpec((1, Ho, Wo, C), lambda n: (n, 0, 0, 0)),
        compiler_params=pltpu.CompilerParams(
            dimension_semantics=("parallel",)),
    )(x, cmat)


# --------------------------------------------------------------------------
# CBAM: (1) channel attention gate + channel-wise mean/max maps,
#       (2) 7x7 spatial-attention conv as banded matmuls on (H, W) maps,
#       (3) fused apply (x * ca * sa) + optional BatchNorm + optional ReLU.
# --------------------------------------------------------------------------
def _cbam_stats_kernel(x_ref, fc1_ref, fc2_ref, g_ref, mean_ref, max_ref):
    H, W, C = x_ref.shape[1], x_ref.shape[2], x_ref.shape[3]
    x = x_ref[0]
    xf = x.reshape(H * W, C)
    avg = jnp.mean(xf, axis=0, keepdims=True)         # (1, C)
    mx = jnp.max(xf, axis=0, keepdims=True)           # (1, C)
    w1 = fc1_ref[...]
    w2 = fc2_ref[...]
    ha = jnp.maximum(jnp.dot(avg, w1, preferred_element_type=jnp.float32), 0.0)
    hm = jnp.maximum(jnp.dot(mx, w1, preferred_element_type=jnp.float32), 0.0)
    ca = jnp.dot(ha + hm, w2, preferred_element_type=jnp.float32)   # (1, C)
    g = 1.0 / (1.0 + jnp.exp(-ca))
    g_ref[0] = g
    x1 = x * g.reshape(1, 1, C)
    mean_ref[0] = jnp.mean(x1, axis=-1, keepdims=True)
    max_ref[0] = jnp.max(x1, axis=-1, keepdims=True)


def _cbam_sa_kernel(mean_ref, max_ref, t_ref, o_ref, acc_ref, *, H):
    acc_ref[...] = jnp.zeros_like(acc_ref)
    m = mean_ref[0]                                    # (H, W)
    mx = max_ref[0]
    for dy in range(7):
        y0 = max(0, 3 - dy)
        y1 = min(H, H + 3 - dy)
        if y1 <= y0:
            continue
        rows = y1 - y0
        i0 = y0 + dy - 3
        contrib = (jnp.dot(m[i0:i0 + rows], t_ref[0, dy],
                           preferred_element_type=jnp.float32) +
                   jnp.dot(mx[i0:i0 + rows], t_ref[1, dy],
                           preferred_element_type=jnp.float32))
        acc_ref[y0:y1] += contrib
    o_ref[0] = 1.0 / (1.0 + jnp.exp(-acc_ref[...]))


def _cbam_apply_kernel(x_ref, g_ref, s_ref, sc_ref, sh_ref, o_ref,
                       *, apply_bn, apply_relu):
    x = x_ref[0]
    g = g_ref[0, 0, :]
    y = x * g[None, None, :] * s_ref[0]
    if apply_bn:
        y = y * sc_ref[...][None, None, :] + sh_ref[...][None, None, :]
    if apply_relu:
        y = jnp.maximum(y, 0.0)
    o_ref[0] = y


def _sa_banded(sa_w, W):
    """Banded (W, W) matrices for the 7x7 spatial-attention conv (per channel,
    per kernel row).  Returned shape (2, 7, W, W); zero W-padding implicit."""
    w = sa_w[..., 0]                                   # (7, 7, 2)
    wi = jnp.arange(W)[:, None]
    wo = jnp.arange(W)[None, :]
    dx = wi - wo + 3
    valid = (dx >= 0) & (dx < 7)
    dxc = jnp.clip(dx, 0, 6)
    g = w[:, dxc, :]                                   # (7, W, W, 2)
    g = jnp.where(valid[None, :, :, None], g, 0.0)
    return jnp.transpose(g, (3, 0, 1, 2))              # (2, 7, W, W)


def cbam(x, p, *, bn_scale=None, bn_shift=None, relu=True):
    N, H, W, C = x.shape
    g, mean_m, max_m = pl.pallas_call(
        _cbam_stats_kernel,
        out_shape=(jax.ShapeDtypeStruct((N, 1, C), jnp.float32),
                   jax.ShapeDtypeStruct((N, H, W, 1), jnp.float32),
                   jax.ShapeDtypeStruct((N, H, W, 1), jnp.float32)),
        grid=(N,),
        in_specs=[pl.BlockSpec((1, H, W, C), lambda n: (n, 0, 0, 0)),
                  pl.BlockSpec(p['fc1'].shape, lambda n: (0, 0)),
                  pl.BlockSpec(p['fc2'].shape, lambda n: (0, 0))],
        out_specs=(pl.BlockSpec((1, 1, C), lambda n: (n, 0, 0)),
                   pl.BlockSpec((1, H, W, 1), lambda n: (n, 0, 0, 0)),
                   pl.BlockSpec((1, H, W, 1), lambda n: (n, 0, 0, 0))),
        compiler_params=pltpu.CompilerParams(
            dimension_semantics=("parallel",)),
    )(x, p['fc1'], p['fc2'])

    t = _sa_banded(p['sa_w'], W)
    mean2 = mean_m.reshape(N, H, W)     # HBM round trip switches layout for free
    max2 = max_m.reshape(N, H, W)
    sker = functools.partial(_cbam_sa_kernel, H=H)
    sgate = pl.pallas_call(
        sker,
        out_shape=jax.ShapeDtypeStruct((N, H, W), jnp.float32),
        grid=(N,),
        in_specs=[pl.BlockSpec((1, H, W), lambda n: (n, 0, 0)),
                  pl.BlockSpec((1, H, W), lambda n: (n, 0, 0)),
                  pl.BlockSpec((2, 7, W, W), lambda n: (0, 0, 0, 0))],
        out_specs=pl.BlockSpec((1, H, W), lambda n: (n, 0, 0)),
        scratch_shapes=[pltpu.VMEM((H, W), jnp.float32)],
        compiler_params=pltpu.CompilerParams(
            dimension_semantics=("parallel",)),
    )(mean2, max2, t)
    sg = sgate.reshape(N, H, W, 1)

    apply_bn = bn_scale is not None
    if not apply_bn:
        bn_scale = jnp.ones((C,), jnp.float32)
        bn_shift = jnp.zeros((C,), jnp.float32)
    aker = functools.partial(_cbam_apply_kernel, apply_bn=apply_bn,
                             apply_relu=relu)
    return pl.pallas_call(
        aker,
        out_shape=jax.ShapeDtypeStruct((N, H, W, C), jnp.float32),
        grid=(N,),
        in_specs=[pl.BlockSpec((1, H, W, C), lambda n: (n, 0, 0, 0)),
                  pl.BlockSpec((1, 1, C), lambda n: (n, 0, 0)),
                  pl.BlockSpec((1, H, W, 1), lambda n: (n, 0, 0, 0)),
                  pl.BlockSpec((C,), lambda n: (0,)),
                  pl.BlockSpec((C,), lambda n: (0,))],
        out_specs=pl.BlockSpec((1, H, W, C), lambda n: (n, 0, 0, 0)),
        compiler_params=pltpu.CompilerParams(
            dimension_semantics=("parallel",)),
    )(x, g, sg, bn_scale, bn_shift)


# --------------------------------------------------------------------------
# unetUp + Unet decoder wrappers
# --------------------------------------------------------------------------
def unet_up(x_skip, x_low, p):
    up = upsample_bilinear_2x(x_low)
    # conv1 (BatchNorm1 folded into its weights/bias), skip-concat done
    # virtually inside the conv reduction.
    x = conv2d_multi([x_skip, up], [p['w1a'], p['w1b']], p['b1'])
    x = cbam(x, p['cbam1'], relu=True)                       # cbam1 + ReLU
    x = conv2d_multi([x], [p['w2']], p['b2'])
    x = cbam(x, p['cbam2'], bn_scale=p['bn2_scale'],
             bn_shift=p['bn2_shift'], relu=True)             # cbam2 + bn2 + ReLU
    return x


def unet_forward(f1, f2, f3, f4, f5, params):
    up4 = unet_up(f4, f5, params['up4'])
    up3 = unet_up(f3, up4, params['up3'])
    up2 = unet_up(f2, up3, params['up2'])
    up1 = unet_up(f1, up2, params['up1'])
    # up_conv (resnet50 branch): upsample -> conv/relu -> conv/relu
    x = upsample_bilinear_2x(up1)
    x = conv2d_multi([x], [params['uc_w1']], params['uc_b1'], relu=True)
    x = conv2d_multi([x], [params['uc_w2']], params['uc_b2'], relu=True)
    return conv2d_multi([x], [params['fin_w']], params['fin_b'])   # final 1x1


# --------------------------------------------------------------------------
# Deterministic parameter initialization (synthetic, no checkpoint)
# --------------------------------------------------------------------------
class _KeyGen:
    def __init__(self, key):
        self._key = key

    def __call__(self):
        self._key, k = jax.random.split(self._key)
        return k


def _conv_w(kg, k, cin, cout):
    return (jax.random.normal(kg(), (k, k, cin, cout), jnp.float32)
            * (1.0 / float(k * k * cin) ** 0.5))


def _bn_params(kg, c, eps=1e-5):
    gamma = 1.0 + 0.1 * jax.random.normal(kg(), (c,), jnp.float32)
    beta = 0.1 * jax.random.normal(kg(), (c,), jnp.float32)
    mean = 0.1 * jax.random.normal(kg(), (c,), jnp.float32)
    var = 1.0 + jnp.abs(0.1 * jax.random.normal(kg(), (c,), jnp.float32))
    scale = gamma / jnp.sqrt(var + eps)
    shift = beta - mean * scale
    return scale, shift


def _cbam_params(kg, c):
    return {
        'fc1': jax.random.normal(kg(), (c, c // 16), jnp.float32) / float(c) ** 0.5,
        'fc2': jax.random.normal(kg(), (c // 16, c), jnp.float32) / float(c // 16) ** 0.5,
        'sa_w': jax.random.normal(kg(), (7, 7, 2, 1), jnp.float32) * 0.1,
    }


def _unet_up_params(kg, ca, cb, cout):
    w1 = _conv_w(kg, 3, ca + cb, cout)
    b1 = 0.01 * jax.random.normal(kg(), (cout,), jnp.float32)
    bn1_scale, bn1_shift = _bn_params(kg, cout)
    w1f = w1 * bn1_scale[None, None, None, :]       # fold eval-mode BN1
    b1f = b1 * bn1_scale + bn1_shift
    w2 = _conv_w(kg, 3, cout, cout)
    b2 = 0.01 * jax.random.normal(kg(), (cout,), jnp.float32)
    bn2_scale, bn2_shift = _bn_params(kg, cout)
    return {
        'w1a': w1f[:, :, :ca, :].astype(jnp.bfloat16),
        'w1b': w1f[:, :, ca:, :].astype(jnp.bfloat16),
        'b1': b1f,
        'w2': w2.astype(jnp.bfloat16),
        'b2': b2,
        'cbam1': _cbam_params(kg, cout),
        'cbam2': _cbam_params(kg, cout),
        'bn2_scale': bn2_scale,
        'bn2_shift': bn2_shift,
    }


def init_params(key, num_classes=21):
    kg = _KeyGen(key)
    # resnet50 backbone: in_filters = [192, 512, 1024, 3072] = skip + upsampled
    out_filters = [64, 128, 256, 512]
    return {
        'up4': _unet_up_params(kg, 1024, 2048, out_filters[3]),
        'up3': _unet_up_params(kg, 512, 512, out_filters[2]),
        'up2': _unet_up_params(kg, 256, 256, out_filters[1]),
        'up1': _unet_up_params(kg, 64, 128, out_filters[0]),
        'uc_w1': _conv_w(kg, 3, out_filters[0], out_filters[0]).astype(jnp.bfloat16),
        'uc_b1': 0.01 * jax.random.normal(kg(), (out_filters[0],), jnp.float32),
        'uc_w2': _conv_w(kg, 3, out_filters[0], out_filters[0]).astype(jnp.bfloat16),
        'uc_b2': 0.01 * jax.random.normal(kg(), (out_filters[0],), jnp.float32),
        'fin_w': _conv_w(kg, 1, out_filters[0], num_classes).astype(jnp.bfloat16),
        'fin_b': 0.01 * jax.random.normal(kg(), (num_classes,), jnp.float32),
    }


if __name__ == "__main__":
    key = jax.random.PRNGKey(0)
    k_in, k_par = jax.random.split(key)
    params = init_params(k_par, num_classes=21)

    # Synthetic backbone/MSFFE output features (resnet50 channel layout), NCHW:
    N = 1
    ks = jax.random.split(k_in, 5)
    shapes = [(N, 64, 32, 32), (N, 256, 16, 16), (N, 512, 8, 8),
              (N, 1024, 4, 4), (N, 2048, 2, 2)]
    feats_nchw = [jax.random.normal(k, s, jnp.float32)
                  for k, s in zip(ks, shapes)]
    feats = [jnp.transpose(f, (0, 2, 3, 1)) for f in feats_nchw]   # -> NHWC

    out_nhwc = unet_forward(*feats, params)
    out = jnp.transpose(out_nhwc, (0, 3, 1, 2))     # back to NCHW
    jax.block_until_ready(out)
    assert out.shape == (N, 21, 64, 64) and out.dtype == jnp.float32
    print("KERNEL_OK")
</pallas_src>

<mosaic_0001>
module attributes {stable_mosaic.version = 11 : i64} {
  func.func @_upsample_kernel(%arg0: i32, %arg1: memref<1x2x2x2048xf32, #tpu.memory_space<vmem>>, %arg2: memref<4x2xf32, #tpu.memory_space<vmem>>, %arg3: memref<1x4x4x2048xf32, #tpu.memory_space<vmem>>) attributes {dimension_semantics = [#tpu.dimension_semantics<parallel>], iteration_bounds = array<i64: 1>, scalar_prefetch = 0 : i64, scratch_operands = 0 : i64, tpu.core_type = #tpu.core_type<tc>, window_params = [{transform_indices = @transform_0, window_bounds = array<i64: 1, 2, 2, 2048>}, {pipeline_mode = #tpu.pipeline_mode<synchronous>, transform_indices = @transform_1, window_bounds = array<i64: 4, 2>}, {transform_indices = @transform_2, window_bounds = array<i64: 1, 4, 4, 2048>}]} {
    %c0 = arith.constant 0 : index
    %c0_0 = arith.constant 0 : index
    %c0_1 = arith.constant 0 : index
    %c0_2 = arith.constant 0 : index
    %0 = vector.load %arg1[%c0, %c0_0, %c0_1, %c0_2] : memref<1x2x2x2048xf32, #tpu.memory_space<vmem>>, vector<1x1x2x2048xf32>
    %1 = vector.shape_cast %0 : vector<1x1x2x2048xf32> to vector<2x2048xf32>
    %c0_3 = arith.constant 0 : index
    %c0_4 = arith.constant 0 : index
    %2 = vector.load %arg2[%c0_3, %c0_4] : memref<4x2xf32, #tpu.memory_space<vmem>>, vector<4x2xf32>
    %cst = arith.constant dense<0.000000e+00> : vector<4x2048xf32>
    %3 = tpu.matmul %2, %1, %cst {dimension_numbers = #tpu.dot_dimension_numbers<[1], [0], [0], [1], [0, 0, 1, 1], [], []>} : vector<4x2xf32>, vector<2x2048xf32>, vector<4x2048xf32> -> vector<4x2048xf32>
    %c0_5 = arith.constant 0 : index
    %c0_6 = arith.constant 0 : index
    %c0_7 = arith.constant 0 : index
    %c0_8 = arith.constant 0 : index
    %4 = vector.load %arg3[%c0_5, %c0_6, %c0_7, %c0_8] : memref<1x4x4x2048xf32, #tpu.memory_space<vmem>>, vector<1x1x4x2048xf32>
    %5 = vector.shape_cast %4 : vector<1x1x4x2048xf32> to vector<4x2048xf32>
    %6 = vector.shape_cast %3 : vector<4x2048xf32> to vector<1x1x4x2048xf32>
    tpu.vector_store %arg3[%c0_5, %c0_6, %c0_7, %c0_8], %6 {strides = array<i32>} : memref<1x4x4x2048xf32, #tpu.memory_space<vmem>>, vector<1x1x4x2048xf32>,
    %c0_9 = arith.constant 0 : index
    %c0_10 = arith.constant 0 : index
    %c0_11 = arith.constant 0 : index
    %c0_12 = arith.constant 0 : index
    %7 = vector.load %arg1[%c0_9, %c0_10, %c0_11, %c0_12] : memref<1x2x2x2048xf32, #tpu.memory_space<vmem>>, vector<1x1x2x2048xf32>
    %8 = vector.shape_cast %7 : vector<1x1x2x2048xf32> to vector<2x2048xf32>
    %cst_13 = arith.constant 0.666666686 : f32
    %9 = vector.broadcast %cst_13 : f32 to vector<2x2048xf32>
    %10 = arith.mulf %9, %8 : vector<2x2048xf32>
    %c0_14 = arith.constant 0 : index
    %c1 = arith.constant 1 : index
    %c0_15 = arith.constant 0 : index
    %c0_16 = arith.constant 0 : index
    %11 = vector.load %arg1[%c0_14, %c1, %c0_15, %c0_16] : memref<1x2x2x2048xf32, #tpu.memory_space<vmem>>, vector<1x1x2x2048xf32>
    %12 = vector.shape_cast %11 : vector<1x1x2x2048xf32> to vector<2x2048xf32>
    %cst_17 = arith.constant 0.333333343 : f32
    %13 = vector.broadcast %cst_17 : f32 to vector<2x2048xf32>
    %14 = arith.mulf %13, %12 : vector<2x2048xf32>
    %15 = arith.addf %10, %14 : vector<2x2048xf32>
    %c0_18 = arith.constant 0 : index
    %c0_19 = arith.constant 0 : index
    %16 = vector.load %arg2[%c0_18, %c0_19] : memref<4x2xf32, #tpu.memory_space<vmem>>, vector<4x2xf32>
    %cst_20 = arith.constant dense<0.000000e+00> : vector<4x2048xf32>
    %17 = tpu.matmul %16, %15, %cst_20 {dimension_numbers = #tpu.dot_dimension_numbers<[1], [0], [0], [1], [0, 0, 1, 1], [], []>} : vector<4x2xf32>, vector<2x2048xf32>, vector<4x2048xf32> -> vector<4x2048xf32>
    %c0_21 = arith.constant 0 : index
    %c1_22 = arith.constant 1 : index
    %c0_23 = arith.constant 0 : index
    %c0_24 = arith.constant 0 : index
    %18 = vector.load %arg3[%c0_21, %c1_22, %c0_23, %c0_24] : memref<1x4x4x2048xf32, #tpu.memory_space<vmem>>, vector<1x1x4x2048xf32>
    %19 = vector.shape_cast %18 : vector<1x1x4x2048xf32> to vector<4x2048xf32>
    %20 = vector.shape_cast %17 : vector<4x2048xf32> to vector<1x1x4x2048xf32>
    tpu.vector_store %arg3[%c0_21, %c1_22, %c0_23, %c0_24], %20 {strides = array<i32>} : memref<1x4x4x2048xf32, #tpu.memory_space<vmem>>, vector<1x1x4x2048xf32>,
    %c0_25 = arith.constant 0 : index
    %c0_26 = arith.constant 0 : index
    %c0_27 = arith.constant 0 : index
    %c0_28 = arith.constant 0 : index
    %21 = vector.load %arg1[%c0_25, %c0_26, %c0_27, %c0_28] : memref<1x2x2x2048xf32, #tpu.memory_space<vmem>>, vector<1x1x2x2048xf32>
    %22 = vector.shape_cast %21 : vector<1x1x2x2048xf32> to vector<2x2048xf32>
    %cst_29 = arith.constant 0.333333343 : f32
    %23 = vector.broadcast %cst_29 : f32 to vector<2x2048xf32>
    %24 = arith.mulf %23, %22 : vector<2x2048xf32>
    %c0_30 = arith.constant 0 : index
    %c1_31 = arith.constant 1 : index
    %c0_32 = arith.constant 0 : index
    %c0_33 = arith.constant 0 : index
    %25 = vector.load %arg1[%c0_30, %c1_31, %c0_32, %c0_33] : memref<1x2x2x2048xf32, #tpu.memory_space<vmem>>, vector<1x1x2x2048xf32>
    %26 = vector.shape_cast %25 : vector<1x1x2x2048xf32> to vector<2x2048xf32>
    %cst_34 = arith.constant 0.666666686 : f32
    %27 = vector.broadcast %cst_34 : f32 to vector<2x2048xf32>
    %28 = arith.mulf %27, %26 : vector<2x2048xf32>
    %29 = arith.addf %24, %28 : vector<2x2048xf32>
    %c0_35 = arith.constant 0 : index
    %c0_36 = arith.constant 0 : index
    %30 = vector.load %arg2[%c0_35, %c0_36] : memref<4x2xf32, #tpu.memory_space<vmem>>, vector<4x2xf32>
    %cst_37 = arith.constant dense<0.000000e+00> : vector<4x2048xf32>
    %31 = tpu.matmul %30, %29, %cst_37 {dimension_numbers = #tpu.dot_dimension_numbers<[1], [0], [0], [1], [0, 0, 1, 1], [], []>} : vector<4x2xf32>, vector<2x2048xf32>, vector<4x2048xf32> -> vector<4x2048xf32>
    %c0_38 = arith.constant 0 : index
    %c2 = arith.constant 2 : index
    %c0_39 = arith.constant 0 : index
    %c0_40 = arith.constant 0 : index
    %32 = vector.load %arg3[%c0_38, %c2, %c0_39, %c0_40] : memref<1x4x4x2048xf32, #tpu.memory_space<vmem>>, vector<1x1x4x2048xf32>
    %33 = vector.shape_cast %32 : vector<1x1x4x2048xf32> to vector<4x2048xf32>
    %34 = vector.shape_cast %31 : vector<4x2048xf32> to vector<1x1x4x2048xf32>
    tpu.vector_store %arg3[%c0_38, %c2, %c0_39, %c0_40], %34 {strides = array<i32>} : memref<1x4x4x2048xf32, #tpu.memory_space<vmem>>, vector<1x1x4x2048xf32>,
    %c0_41 = arith.constant 0 : index
    %c0_42 = arith.constant 0 : index
    %c0_43 = arith.constant 0 : index
    %c0_44 = arith.constant 0 : index
    %35 = vector.load %arg1[%c0_41, %c0_42, %c0_43, %c0_44] : memref<1x2x2x2048xf32, #tpu.memory_space<vmem>>, vector<1x1x2x2048xf32>
    %36 = vector.shape_cast %35 : vector<1x1x2x2048xf32> to vector<2x2048xf32>
    %cst_45 = arith.constant 0.000000e+00 : f32
    %37 = vector.broadcast %cst_45 : f32 to vector<2x2048xf32>
    %38 = arith.mulf %37, %36 : vector<2x2048xf32>
    %c0_46 = arith.constant 0 : index
    %c1_47 = arith.constant 1 : index
    %c0_48 = arith.constant 0 : index
    %c0_49 = arith.constant 0 : index
    %39 = vector.load %arg1[%c0_46, %c1_47, %c0_48, %c0_49] : memref<1x2x2x2048xf32, #tpu.memory_space<vmem>>, vector<1x1x2x2048xf32>
    %40 = vector.shape_cast %39 : vector<1x1x2x2048xf32> to vector<2x2048xf32>
    %cst_50 = arith.constant 1.000000e+00 : f32
    %41 = vector.broadcast %cst_50 : f32 to vector<2x2048xf32>
    %42 = arith.mulf %41, %40 : vector<2x2048xf32>
    %43 = arith.addf %38, %42 : vector<2x2048xf32>
    %c0_51 = arith.constant 0 : index
    %c0_52 = arith.constant 0 : index
    %44 = vector.load %arg2[%c0_51, %c0_52] : memref<4x2xf32, #tpu.memory_space<vmem>>, vector<4x2xf32>
    %cst_53 = arith.constant dense<0.000000e+00> : vector<4x2048xf32>
    %45 = tpu.matmul %44, %43, %cst_53 {dimension_numbers = #tpu.dot_dimension_numbers<[1], [0], [0], [1], [0, 0, 1, 1], [], []>} : vector<4x2xf32>, vector<2x2048xf32>, vector<4x2048xf32> -> vector<4x2048xf32>
    %c0_54 = arith.constant 0 : index
    %c3 = arith.constant 3 : index
    %c0_55 = arith.constant 0 : index
    %c0_56 = arith.constant 0 : index
    %46 = vector.load %arg3[%c0_54, %c3, %c0_55, %c0_56] : memref<1x4x4x2048xf32, #tpu.memory_space<vmem>>, vector<1x1x4x2048xf32>
    %47 = vector.shape_cast %46 : vector<1x1x4x2048xf32> to vector<4x2048xf32>
    %48 = vector.shape_cast %45 : vector<4x2048xf32> to vector<1x1x4x2048xf32>
    tpu.vector_store %arg3[%c0_54, %c3, %c0_55, %c0_56], %48 {strides = array<i32>} : memref<1x4x4x2048xf32, #tpu.memory_space<vmem>>, vector<1x1x4x2048xf32>,
    return
  }
  func.func @transform_0(%arg0: i32) -> (i32, i32, i32, i32) {
    %c0_i32 = arith.constant 0 : i32
    %c0_i32_0 = arith.constant 0 : i32
    %c0_i32_1 = arith.constant 0 : i32
    %c0_i32_2 = arith.constant 0 : i32
    return %arg0, %c0_i32, %c0_i32_0, %c0_i32_1 : i32, i32, i32, i32
  }
  func.func @transform_1(%arg0: i32) -> (i32, i32) {
    %c0_i32 = arith.constant 0 : i32
    %c0_i32_0 = arith.constant 0 : i32
    %c0_i32_1 = arith.constant 0 : i32
    return %c0_i32, %c0_i32_0 : i32, i32
  }
  func.func @transform_2(%arg0: i32) -> (i32, i32, i32, i32) {
    %c0_i32 = arith.constant 0 : i32
    %c0_i32_0 = arith.constant 0 : i32
    %c0_i32_1 = arith.constant 0 : i32
    %c0_i32_2 = arith.constant 0 : i32
    return %arg0, %c0_i32, %c0_i32_0, %c0_i32_1 : i32, i32, i32, i32
  }
}

</mosaic_0001>

<bundles_post_ra>
// kernel: tpu_custom_call.1
= control target key start
LH: loop header
LB: loop body
LE: loop exit
PB: predicated region body
PF: predicated region fallthrough
CT: control target
= control target key end

     0   :  { %7 = vsyncpa [#allocation3], 0  ;;  %s2295_s0 = inlined_call_operand.hbm [shape: f32[1,2,2,2048], index: 0, kind: input, shape index: {}]   ;;  %s2296_s1 = inlined_call_operand.vmem [shape: f32[4,2], index: 1, kind: input, shape index: {}]   ;;  %s2297_s2 = inlined_call_operand.hbm [shape: f32[1,4,4,2048], index: 2, kind: output, shape index: {}]  }
   0x1   :  { %8 = vsyncpa [#allocation4], 0  ;;  %s13_s11 = sshll.u32 %s2295_s0, 4  ;;  %s2016_s12 = smov [#allocation2]   ;;  %s14_s11 = int_to_ptr.hbm [resolvable:$true] %s13_s11 }
   0x2   :  { %s15_s13 = sshll.u32 %s2016_s12, 4  ;;  %s2017_s14 = smov 512   ;;  %s16_s13 = int_to_ptr.vmem [resolvable:$true] %s15_s13 }
   0x3   :  { %s2018_s15 = smov 32  }
   0x4   :  { %21 = dma.hbm_to_vmem [thread:$0]  %s14_s11, 1024, %s16_s13, [#allocation3], %s2017_s14, %s2017_s14, %s2018_s15  }
   0x5   :  { %2012 = dma.done.wait [#allocation3], 1024  }
   0x6   :  { %2013 = vsyncadd [#allocation3], 4294966272  ;;  %v2040_v0 = vld [vmem:[#allocation2] sm:$0xff]  ;;  %v2042_v1 = vld [vmem:[#allocation2 + $0x8] sm:$0xff]  ;;  %vm62_vm0 = vcmask 1041408   ;;  %vm58_vm1 = vcmask 15360  }
   0x7   :  { %37 = vst [vmem:[#allocation1] ss:$4 sm:$0xff] %v2040_v0  ;;  %v2049_v2 = vld [vmem:[%s2296_s1] sm:$0xf]  ;;  %v2051_v3 = vld [vmem:[#allocation2 + $0x10] sm:$0xff]  ;;  %v2066_v13 = vld [vmem:[#allocation2 + $0x20] sm:$0xff] }
   0x8   :  { %39 = vst [vmem:[#allocation1 + $0x20] ss:$4 sm:$0xff] %v2042_v1  ;;  %v2053_v6 = vld [vmem:[#allocation2 + $0x18] sm:$0xff]  ;;  %v2073_v14 = vld [vmem:[#allocation2 + $0x28] sm:$0xff]  ;;  %v468_v15 = vmul.f32 0.6666667, %v2040_v0 }
   0x9   :  { %v477_v16 = vmul.f32 0.33333334, %v2066_v13  ;;  %v469_v17 = vmul.f32 0.6666667, %v2042_v1  ;;  %v478_v18 = vmul.f32 0.33333334, %v2073_v14 }
   0xa   :  { %v2095_v29 = vld [vmem:[#allocation2 + $0x30] sm:$0xff]  ;;  %v2099_v30 = vld [vmem:[#allocation2 + $0x38] sm:$0xff]  ;;  %v470_v31 = vmul.f32 0.6666667, %v2051_v3  ;;  %v471_v33 = vmul.f32 0.6666667, %v2053_v6 }
   0xb   :  { %v481_v21 = vadd.f32 %v477_v16, %v468_v15  ;;  %v482_v24 = vadd.f32 %v478_v18, %v469_v17  ;;  %v479_v32 = vmul.f32 0.33333334, %v2095_v29  ;;  %v480_v34 = vmul.f32 0.33333334, %v2099_v30  ;;  %v2136_v49 = vld [vmem:[%s2296_s1] sm:$0xf] }
   0xc   :  { %v919_v45 = vmul.f32 0.33333334, %v2040_v0  ;;  %v927_v46 = vmul.f32 0.6666667, %v2066_v13  ;;  %v920_v47 = vmul.f32 0.33333334, %v2042_v1 }
   0xd   :  { %v483_v37 = vadd.f32 %v479_v32, %v470_v31  ;;  %v484_v40 = vadd.f32 %v480_v34, %v471_v33  ;;  %v928_v48 = vmul.f32 0.6666667, %v2073_v14  ;;  %v921_v60 = vmul.f32 0.33333334, %v2051_v3  ;;  %s1817_s26 = sshll.u32 %s2297_s2, 4  ;;  %s2020_s27 = smov 1024   ;;  %s1818_s26 = int_to_ptr.hbm [resolvable:$true] %s1817_s26 }
   0xe   :  { %v43_v4 = vld.sshfl [vmem:[#allocation1 + $0x18] sm:$0xff pattern:$0x73625140]  ;;  %v42_v5 = vld.sshfl [vmem:[#allocation1 + $0x10] sm:$0xff pattern:$0x73625140]  ;;  %v931_v52 = vadd.f32 %v927_v46, %v919_v45 }
   0xf   :  { %1836 = vmatpush.msk.msra.mxu3 %vm62_vm0, %v43_v4  ;;  %v47_v7 = vld.sshfl [vmem:[#allocation1 + $0x38] sm:$0xff pattern:$0x73625140]  ;;  %1834 = vmatpush.msk.msra.mxu2 %vm62_vm0, %v42_v5  ;;  %v46_v8 = vld.sshfl [vmem:[#allocation1 + $0x30] sm:$0xff pattern:$0x73625140]  ;;  %v932_v54 = vadd.f32 %v928_v48, %v920_v47 }
  0x10   :  { %1837 = vmatmul.msk.f32.vlgmr.msra.gmra.mxu3 %vm58_vm1, %v2049_v2  ;;  %1835 = vmatmul.msk.f32.vlgmr.msra.gmra.mxu2 %vm58_vm1, %v2049_v2  ;;  %v41_v9 = vld.sshfl [vmem:[#allocation1 + $0x8] sm:$0xff pattern:$0x73625140]  ;;  %v40_v11 = vld.sshfl [vmem:[#allocation1] sm:$0xff pattern:$0x73625140] }
  0x11   :  { %v45_v10 = vld.sshfl [vmem:[#allocation1 + $0x28] sm:$0xff pattern:$0x73625140]  ;;  %1844 = vmatpush.msk.msrb.mxu3 %vm62_vm0, %v47_v7  ;;  %1842 = vmatpush.msk.msrb.mxu2 %vm62_vm0, %v46_v8  ;;  %v44_v12 = vld.sshfl [vmem:[#allocation1 + $0x20] sm:$0xff pattern:$0x73625140] }
  0x12   :  { %1832 = vmatpush.msk.msra.mxu1 %vm62_vm0, %v41_v9  ;;  %48 = vst [vmem:[#allocation1] ss:$4 sm:$0xff] %v2051_v3  ;;  %1830 = vmatpush.msk.msra.mxu0 %vm62_vm0, %v40_v11  ;;  %v929_v61 = vmul.f32 0.6666667, %v2095_v29  ;;  %v922_v7 = vmul.f32 0.33333334, %v2053_v6 }
  0x13   :  { %1833 = vmatmul.msk.f32.vlgmr.msra.gmra.mxu1 %vm58_vm1, %v2049_v2  ;;  %1831 = vmatmul.msk.f32.vlgmr.msra.gmra.mxu0 %vm58_vm1, %v2049_v2  ;;  %49 = vst [vmem:[#allocation1 + $0x20] ss:$4 sm:$0xff] %v2053_v6  ;;  %v930_v8 = vmul.f32 0.6666667, %v2099_v30  ;;  %v1369_v16 = vmul.f32 0.0, %v2040_v0  ;;  %v1370_v0 = vmul.f32 0.0, %v2042_v1 }
  0x14   :  { %1840 = vmatpush.msk.msrb.mxu1 %vm62_vm0, %v45_v10  ;;  %1838 = vmatpush.msk.msrb.mxu0 %vm62_vm0, %v44_v12  ;;  %v933_v62 = vadd.f32 %v929_v61, %v921_v60  ;;  %v1371_v1 = vmul.f32 0.0, %v2051_v3  ;;  %v1372_v3 = vmul.f32 0.0, %v2053_v6  ;;  %v1381_v6 = vld [vmem:[%s2296_s1] sm:$0xf]  ;;  %vm439_vm2 = vcmask 1043456   ;;  %s2021_s28 = smov 64  }
  0x15   :  { %v934_v11 = vadd.f32 %v930_v8, %v922_v7 }
  0x16   :  { %v1380_v34 = vadd.f32 %v1372_v3, %v2099_v30 }
  0x18   :  { %1845 = vmatmul.msk.f32.vlgmr.msrb.gmra.mxu3 %vm58_vm1, %v2049_v2  ;;  %1843 = vmatmul.msk.f32.vlgmr.msrb.gmra.mxu2 %vm58_vm1, %v2049_v2 }
  0x19   :  { %v53_v19 = vld.sshfl [vmem:[#allocation1 + $0x18] sm:$0xff pattern:$0x73625140]  ;;  %v52_v20 = vld.sshfl [vmem:[#allocation1 + $0x10] sm:$0xff pattern:$0x73625140] }
  0x1a   :  { %1852 = vmatpush.msk.msra.mxu3 %vm62_vm0, %v53_v19  ;;  %1850 = vmatpush.msk.msra.mxu2 %vm62_vm0, %v52_v20  ;;  %v51_v22 = vld.sshfl [vmem:[#allocation1 + $0x8] sm:$0xff pattern:$0x73625140]  ;;  %v50_v23 = vld.sshfl [vmem:[#allocation1] sm:$0xff pattern:$0x73625140]  ;;  %v1377_v19 = vadd.f32 %v1369_v16, %v2066_v13 }
  0x1b   :  { %1841 = vmatmul.msk.f32.vlgmr.msrb.gmra.mxu1 %vm58_vm1, %v2049_v2  ;;  %1839 = vmatmul.msk.f32.vlgmr.msrb.gmra.mxu0 %vm58_vm1, %v2049_v2  ;;  %v57_v25 = vld.sshfl [vmem:[#allocation1 + $0x38] sm:$0xff pattern:$0x73625140]  ;;  %v56_v26 = vld.sshfl [vmem:[#allocation1 + $0x30] sm:$0xff pattern:$0x73625140] }
  0x1c   :  { %1848 = vmatpush.msk.msra.mxu1 %vm62_vm0, %v51_v22  ;;  %1846 = vmatpush.msk.msra.mxu0 %vm62_vm0, %v50_v23  ;;  %v55_v27 = vld.sshfl [vmem:[#allocation1 + $0x28] sm:$0xff pattern:$0x73625140]  ;;  %v54_v28 = vld.sshfl [vmem:[#allocation1 + $0x20] sm:$0xff pattern:$0x73625140]  ;;  %v1378_v23 = vadd.f32 %v1370_v0, %v2073_v14  ;;  %v1379_v14 = vadd.f32 %v1371_v1, %v2095_v29 }
  0x1d   :  { %1860 = vmatpush.msk.msrb.mxu3 %vm62_vm0, %v57_v25  ;;  %1858 = vmatpush.msk.msrb.mxu2 %vm62_vm0, %v56_v26  ;;  %490 = vst [vmem:[#allocation1] ss:$4 sm:$0xff] %v481_v21  ;;  %v935_v13 = vld [vmem:[%s2296_s1] sm:$0xf]  ;;  %s2019_s1 = smov [#allocation5]  }
  0x1e   :  { %1856 = vmatpush.msk.msrb.mxu1 %vm62_vm0, %v55_v27  ;;  %1854 = vmatpush.msk.msrb.mxu0 %vm62_vm0, %v54_v28  ;;  %492 = vst [vmem:[#allocation1 + $0x20] ss:$4 sm:$0xff] %v482_v24  ;;  %s1815_s23 = sshll.u32 %s2019_s1, 4  ;;  %s1816_s23 = int_to_ptr.vmem [resolvable:$true] %s1815_s23 }
  0x20   :  { %1853 = vmatmul.msk.f32.vlgmr.msra.gmra.mxu3 %vm58_vm1, %v2049_v2  ;;  %1851 = vmatmul.msk.f32.vlgmr.msra.gmra.mxu2 %vm58_vm1, %v2049_v2 }
  0x23   :  { %1849 = vmatmul.msk.f32.vlgmr.msra.gmra.mxu1 %vm58_vm1, %v2049_v2  ;;  %1847 = vmatmul.msk.f32.vlgmr.msra.gmra.mxu0 %vm58_vm1, %v2049_v2 }
  0x24   :  { %v496_v35 = vld.sshfl [vmem:[#allocation1 + $0x18] sm:$0xff pattern:$0x73625140]  ;;  %v495_v36 = vld.sshfl [vmem:[#allocation1 + $0x10] sm:$0xff pattern:$0x73625140] }
  0x25   :  { %1868 = vmatpush.msk.msra.mxu3 %vm62_vm0, %v496_v35  ;;  %1866 = vmatpush.msk.msra.mxu2 %vm62_vm0, %v495_v36  ;;  %v494_v38 = vld.sshfl [vmem:[#allocation1 + $0x8] sm:$0xff pattern:$0x73625140]  ;;  %v493_v39 = vld.sshfl [vmem:[#allocation1] sm:$0xff pattern:$0x73625140] }
  0x26   :  { %1864 = vmatpush.msk.msra.mxu1 %vm62_vm0, %v494_v38  ;;  %1862 = vmatpush.msk.msra.mxu0 %vm62_vm0, %v493_v39  ;;  %v500_v41 = vld.sshfl [vmem:[#allocation1 + $0x38] sm:$0xff pattern:$0x73625140]  ;;  %v499_v42 = vld.sshfl [vmem:[#allocation1 + $0x30] sm:$0xff pattern:$0x73625140] }
  0x27   :  { %v497_v43 = vld.sshfl [vmem:[#allocation1 + $0x20] sm:$0xff pattern:$0x73625140]  ;;  %v498_v44 = vld.sshfl [vmem:[#allocation1 + $0x28] sm:$0xff pattern:$0x73625140] }
  0x28   :  { %1861 = vmatmul.msk.f32.vlgmr.msrb.gmra.mxu3 %vm58_vm1, %v2049_v2  ;;  %1859 = vmatmul.msk.f32.vlgmr.msrb.gmra.mxu2 %vm58_vm1, %v2049_v2  ;;  %501 = vst [vmem:[#allocation1] ss:$4 sm:$0xff] %v483_v37 }
  0x29   :  { %1876 = vmatpush.msk.msrb.mxu3 %vm62_vm0, %v500_v41  ;;  %1874 = vmatpush.msk.msrb.mxu2 %vm62_vm0, %v499_v42  ;;  %502 = vst [vmem:[#allocation1 + $0x20] ss:$4 sm:$0xff] %v484_v40 }
  0x2b   :  { %1857 = vmatmul.msk.f32.vlgmr.msrb.gmra.mxu1 %vm58_vm1, %v2049_v2  ;;  %1855 = vmatmul.msk.f32.vlgmr.msrb.gmra.mxu0 %vm58_vm1, %v2049_v2 }
  0x2c   :  { %1872 = vmatpush.msk.msrb.mxu1 %vm62_vm0, %v498_v44  ;;  %1870 = vmatpush.msk.msrb.mxu0 %vm62_vm0, %v497_v43 }
  0x2f   :  { %v506_v50 = vld.sshfl [vmem:[#allocation1 + $0x18] sm:$0xff pattern:$0x73625140]  ;;  %v505_v51 = vld.sshfl [vmem:[#allocation1 + $0x10] sm:$0xff pattern:$0x73625140] }
  0x30   :  { %1869 = vmatmul.msk.f32.vlgmr.msra.gmra.mxu3 %vm58_vm1, %v2136_v49  ;;  %1867 = vmatmul.msk.f32.vlgmr.msra.gmra.mxu2 %vm58_vm1, %v2136_v49  ;;  %v503_v53 = vld.sshfl [vmem:[#allocation1] sm:$0xff pattern:$0x73625140]  ;;  %v504_v55 = vld.sshfl [vmem:[#allocation1 + $0x8] sm:$0xff pattern:$0x73625140] }
  0x31   :  { %1884 = vmatpush.msk.msra.mxu3 %vm62_vm0, %v506_v50  ;;  %1882 = vmatpush.msk.msra.mxu2 %vm62_vm0, %v505_v51  ;;  %v510_v56 = vld.sshfl [vmem:[#allocation1 + $0x38] sm:$0xff pattern:$0x73625140]  ;;  %v509_v57 = vld.sshfl [vmem:[#allocation1 + $0x30] sm:$0xff pattern:$0x73625140] }
  0x32   :  { %v507_v58 = vld.sshfl [vmem:[#allocation1 + $0x20] sm:$0xff pattern:$0x73625140]  ;;  %v508_v59 = vld.sshfl [vmem:[#allocation1 + $0x28] sm:$0xff pattern:$0x73625140] }
  0x33   :  { %1865 = vmatmul.msk.f32.vlgmr.msra.gmra.mxu1 %vm58_vm1, %v2136_v49  ;;  %1863 = vmatmul.msk.f32.vlgmr.msra.gmra.mxu0 %vm58_vm1, %v2136_v49  ;;  %940 = vst [vmem:[#allocation1] ss:$4 sm:$0xff] %v931_v52 }
  0x34   :  { %1880 = vmatpush.msk.msra.mxu1 %vm62_vm0, %v504_v55  ;;  %1878 = vmatpush.msk.msra.mxu0 %vm62_vm0, %v503_v53  ;;  %942 = vst [vmem:[#allocation1 + $0x20] ss:$4 sm:$0xff] %v932_v54 }
  0x38   :  { %1877 = vmatmul.msk.f32.vlgmr.msrb.gmra.mxu3 %vm58_vm1, %v2136_v49  ;;  %1875 = vmatmul.msk.f32.vlgmr.msrb.gmra.mxu2 %vm58_vm1, %v2136_v49 }
  0x39   :  { %1892 = vmatpush.msk.msrb.mxu3 %vm62_vm0, %v510_v56  ;;  %1890 = vmatpush.msk.msrb.mxu2 %vm62_vm0, %v509_v57 }
  0x3a   :  { %v943_v63 = vld.sshfl [vmem:[#allocation1] sm:$0xff pattern:$0x73625140]  ;;  %v946_v2 = vld.sshfl [vmem:[#allocation1 + $0x18] sm:$0xff pattern:$0x73625140] }
  0x3b   :  { %1873 = vmatmul.msk.f32.vlgmr.msrb.gmra.mxu1 %vm58_vm1, %v2136_v49  ;;  %1871 = vmatmul.msk.f32.vlgmr.msrb.gmra.mxu0 %vm58_vm1, %v2136_v49  ;;  %v945_v4 = vld.sshfl [vmem:[#allocation1 + $0x10] sm:$0xff pattern:$0x73625140]  ;;  %v944_v5 = vld.sshfl [vmem:[#allocation1 + $0x8] sm:$0xff pattern:$0x73625140] }
  0x3c   :  { %1888 = vmatpush.msk.msrb.mxu1 %vm62_vm0, %v508_v59  ;;  %1886 = vmatpush.msk.msrb.mxu0 %vm62_vm0, %v507_v58  ;;  %951 = vst [vmem:[#allocation1] ss:$4 sm:$0xff] %v933_v62  ;;  %v947_v9 = vld.sshfl [vmem:[#allocation1 + $0x20] sm:$0xff pattern:$0x73625140] }
  0x3d   :  { %v950_v10 = vld.sshfl [vmem:[#allocation1 + $0x38] sm:$0xff pattern:$0x73625140]  ;;  %v949_v12 = vld.sshfl [vmem:[#allocation1 + $0x30] sm:$0xff pattern:$0x73625140] }
  0x3e   :  { %v948_v15 = vld.sshfl [vmem:[#allocation1 + $0x28] sm:$0xff pattern:$0x73625140] }
  0x3f   :  { %952 = vst [vmem:[#allocation1 + $0x20] ss:$4 sm:$0xff] %v934_v11 }
  0x40   :  { %1885 = vmatmul.msk.f32.vlgmr.msra.gmra.mxu3 %vm58_vm1, %v2136_v49  ;;  %1883 = vmatmul.msk.f32.vlgmr.msra.gmra.mxu2 %vm58_vm1, %v2136_v49 }
  0x41   :  { %1900 = vmatpush.msk.msra.mxu3 %vm62_vm0, %v946_v2  ;;  %1898 = vmatpush.msk.msra.mxu2 %vm62_vm0, %v945_v4 }
  0x43   :  { %1881 = vmatmul.msk.f32.vlgmr.msra.gmra.mxu1 %vm58_vm1, %v2136_v49  ;;  %1879 = vmatmul.msk.f32.vlgmr.msra.gmra.mxu0 %vm58_vm1, %v2136_v49  ;;  %v956_v17 = vld.sshfl [vmem:[#allocation1 + $0x18] sm:$0xff pattern:$0x73625140]  ;;  %v955_v18 = vld.sshfl [vmem:[#allocation1 + $0x10] sm:$0xff pattern:$0x73625140] }
  0x44   :  { %1896 = vmatpush.msk.msra.mxu1 %vm62_vm0, %v944_v5  ;;  %1894 = vmatpush.msk.msra.mxu0 %vm62_vm0, %v943_v63  ;;  %v954_v20 = vld.sshfl [vmem:[#allocation1 + $0x8] sm:$0xff pattern:$0x73625140]  ;;  %v953_v21 = vld.sshfl [vmem:[#allocation1] sm:$0xff pattern:$0x73625140] }
  0x45   :  { %1386 = vst [vmem:[#allocation1] ss:$4 sm:$0xff] %v1377_v19 }
  0x46   :  { %v957_v22 = vld.sshfl [vmem:[#allocation1 + $0x20] sm:$0xff pattern:$0x73625140]  ;;  %v960_v24 = vld.sshfl [vmem:[#allocation1 + $0x38] sm:$0xff pattern:$0x73625140] }
  0x47   :  { %v959_v25 = vld.sshfl [vmem:[#allocation1 + $0x30] sm:$0xff pattern:$0x73625140]  ;;  %v958_v26 = vld.sshfl [vmem:[#allocation1 + $0x28] sm:$0xff pattern:$0x73625140] }
  0x48   :  { %1893 = vmatmul.msk.f32.vlgmr.msrb.gmra.mxu3 %vm58_vm1, %v2136_v49  ;;  %1891 = vmatmul.msk.f32.vlgmr.msrb.gmra.mxu2 %vm58_vm1, %v2136_v49  ;;  %1388 = vst [vmem:[#allocation1 + $0x20] ss:$4 sm:$0xff] %v1378_v23 }
  0x49   :  { %1908 = vmatpush.msk.msrb.mxu3 %vm62_vm0, %v950_v10  ;;  %1906 = vmatpush.msk.msrb.mxu2 %vm62_vm0, %v949_v12 }
  0x4b   :  { %1889 = vmatmul.msk.f32.vlgmr.msrb.gmra.mxu1 %vm58_vm1, %v2136_v49  ;;  %1887 = vmatmul.msk.f32.vlgmr.msrb.gmra.mxu0 %vm58_vm1, %v2136_v49 }
  0x4c   :  { %1904 = vmatpush.msk.msrb.mxu1 %vm62_vm0, %v948_v15  ;;  %1902 = vmatpush.msk.msrb.mxu0 %vm62_vm0, %v947_v9  ;;  %v1389_v27 = vld.sshfl [vmem:[#allocation1] sm:$0xff pattern:$0x73625140]  ;;  %v1392_v28 = vld.sshfl [vmem:[#allocation1 + $0x18] sm:$0xff pattern:$0x73625140] }
  0x4d   :  { %v1391_v31 = vld.sshfl [vmem:[#allocation1 + $0x10] sm:$0xff pattern:$0x73625140]  ;;  %v1390_v32 = vld.sshfl [vmem:[#allocation1 + $0x8] sm:$0xff pattern:$0x73625140] }
  0x4e   :  { %1397 = vst [vmem:[#allocation1] ss:$4 sm:$0xff] %v1379_v14 }
  0x4f   :  { %v1393_v29 = vld.sshfl [vmem:[#allocation1 + $0x20] sm:$0xff pattern:$0x73625140]  ;;  %v1396_v33 = vld.sshfl [vmem:[#allocation1 + $0x38] sm:$0xff pattern:$0x73625140] }
  0x50   :  { %1901 = vmatmul.msk.f32.vlgmr.msra.gmra.mxu3 %vm58_vm1, %v935_v13  ;;  %1899 = vmatmul.msk.f32.vlgmr.msra.gmra.mxu2 %vm58_vm1, %v935_v13  ;;  %v1395_v35 = vld.sshfl [vmem:[#allocation1 + $0x30] sm:$0xff pattern:$0x73625140]  ;;  %v1394_v36 = vld.sshfl [vmem:[#allocation1 + $0x28] sm:$0xff pattern:$0x73625140] }
  0x51   :  { %1916 = vmatpush.msk.msra.mxu3 %vm62_vm0, %v956_v17  ;;  %1914 = vmatpush.msk.msra.mxu2 %vm62_vm0, %v955_v18  ;;  %1398 = vst [vmem:[#allocation1 + $0x20] ss:$4 sm:$0xff] %v1380_v34 }
  0x53   :  { %1897 = vmatmul.msk.f32.vlgmr.msra.gmra.mxu1 %vm58_vm1, %v935_v13  ;;  %1895 = vmatmul.msk.f32.vlgmr.msra.gmra.mxu0 %vm58_vm1, %v935_v13 }
  0x54   :  { %1912 = vmatpush.msk.msra.mxu1 %vm62_vm0, %v954_v20  ;;  %1910 = vmatpush.msk.msra.mxu0 %vm62_vm0, %v953_v21 }
  0x55   :  { %v1402_v30 = vld.sshfl [vmem:[#allocation1 + $0x18] sm:$0xff pattern:$0x73625140]  ;;  %v1401_v37 = vld.sshfl [vmem:[#allocation1 + $0x10] sm:$0xff pattern:$0x73625140] }
  0x56   :  { %v1400_v38 = vld.sshfl [vmem:[#allocation1 + $0x8] sm:$0xff pattern:$0x73625140]  ;;  %v1399_v39 = vld.sshfl [vmem:[#allocation1] sm:$0xff pattern:$0x73625140] }
  0x58   :  { %1909 = vmatmul.msk.f32.vlgmr.msrb.gmra.mxu3 %vm58_vm1, %v935_v13  ;;  %1907 = vmatmul.msk.f32.vlgmr.msrb.gmra.mxu2 %vm58_vm1, %v935_v13  ;;  %v1406_v40 = vld.sshfl [vmem:[#allocation1 + $0x38] sm:$0xff pattern:$0x73625140]  ;;  %v1405_v41 = vld.sshfl [vmem:[#allocation1 + $0x30] sm:$0xff pattern:$0x73625140] }
  0x59   :  { %1924 = vmatpush.msk.msrb.mxu3 %vm62_vm0, %v960_v24  ;;  %1922 = vmatpush.msk.msrb.mxu2 %vm62_vm0, %v959_v25  ;;  %v1404_v42 = vld.sshfl [vmem:[#allocation1 + $0x28] sm:$0xff pattern:$0x73625140]  ;;  %v1403_v43 = vld.sshfl [vmem:[#allocation1 + $0x20] sm:$0xff pattern:$0x73625140] }
  0x5b   :  { %1905 = vmatmul.msk.f32.vlgmr.msrb.gmra.mxu1 %vm58_vm1, %v935_v13  ;;  %1903 = vmatmul.msk.f32.vlgmr.msrb.gmra.mxu0 %vm58_vm1, %v935_v13 }
  0x5c   :  { %1920 = vmatpush.msk.msrb.mxu1 %vm62_vm0, %v958_v26  ;;  %1918 = vmatpush.msk.msrb.mxu0 %vm62_vm0, %v957_v22 }
  0x60   :  { %1917 = vmatmul.msk.f32.vlgmr.msra.gmra.mxu3 %vm58_vm1, %v935_v13  ;;  %1915 = vmatmul.msk.f32.vlgmr.msra.gmra.mxu2 %vm58_vm1, %v935_v13 }
  0x61   :  { %1932 = vmatpush.msk.msra.mxu3 %vm62_vm0, %v1392_v28  ;;  %1930 = vmatpush.msk.msra.mxu2 %vm62_vm0, %v1391_v31 }
  0x63   :  { %1913 = vmatmul.msk.f32.vlgmr.msra.gmra.mxu1 %vm58_vm1, %v935_v13  ;;  %1911 = vmatmul.msk.f32.vlgmr.msra.gmra.mxu0 %vm58_vm1, %v935_v13 }
  0x64   :  { %1928 = vmatpush.msk.msra.mxu1 %vm62_vm0, %v1390_v32  ;;  %1926 = vmatpush.msk.msra.mxu0 %vm62_vm0, %v1389_v27 }
  0x68   :  { %1925 = vmatmul.msk.f32.vlgmr.msrb.gmra.mxu3 %vm58_vm1, %v935_v13  ;;  %1923 = vmatmul.msk.f32.vlgmr.msrb.gmra.mxu2 %vm58_vm1, %v935_v13 }
  0x69   :  { %1940 = vmatpush.msk.msrb.mxu3 %vm62_vm0, %v1396_v33  ;;  %1938 = vmatpush.msk.msrb.mxu2 %vm62_vm0, %v1395_v35 }
  0x6b   :  { %1921 = vmatmul.msk.f32.vlgmr.msrb.gmra.mxu1 %vm58_vm1, %v935_v13  ;;  %1919 = vmatmul.msk.f32.vlgmr.msrb.gmra.mxu0 %vm58_vm1, %v935_v13 }
  0x6c   :  { %1936 = vmatpush.msk.msrb.mxu1 %vm62_vm0, %v1394_v36  ;;  %1934 = vmatpush.msk.msrb.mxu0 %vm62_vm0, %v1393_v29 }
  0x70   :  { %1933 = vmatmul.msk.f32.vlgmr.msra.gmra.mxu3 %vm58_vm1, %v1381_v6  ;;  %1931 = vmatmul.msk.f32.vlgmr.msra.gmra.mxu2 %vm58_vm1, %v1381_v6 }
  0x71   :  { %1948 = vmatpush.msk.msra.mxu3 %vm62_vm0, %v1402_v30  ;;  %1946 = vmatpush.msk.msra.mxu2 %vm62_vm0, %v1401_v37 }
  0x73   :  { %1929 = vmatmul.msk.f32.vlgmr.msra.gmra.mxu1 %vm58_vm1, %v1381_v6  ;;  %1927 = vmatmul.msk.f32.vlgmr.msra.gmra.mxu0 %vm58_vm1, %v1381_v6 }
  0x74   :  { %1944 = vmatpush.msk.msra.mxu1 %vm62_vm0, %v1400_v38  ;;  %1942 = vmatpush.msk.msra.mxu0 %vm62_vm0, %v1399_v39 }
  0x78   :  { %1941 = vmatmul.msk.f32.vlgmr.msrb.gmra.mxu3 %vm58_vm1, %v1381_v6  ;;  %1939 = vmatmul.msk.f32.vlgmr.msrb.gmra.mxu2 %vm58_vm1, %v1381_v6 }
  0x79   :  { %1956 = vmatpush.msk.msrb.mxu3 %vm62_vm0, %v1406_v40  ;;  %1954 = vmatpush.msk.msrb.mxu2 %vm62_vm0, %v1405_v41 }
  0x7b   :  { %1937 = vmatmul.msk.f32.vlgmr.msrb.gmra.mxu1 %vm58_vm1, %v1381_v6  ;;  %1935 = vmatmul.msk.f32.vlgmr.msrb.gmra.mxu0 %vm58_vm1, %v1381_v6 }
  0x7c   :  { %1952 = vmatpush.msk.msrb.mxu1 %vm62_vm0, %v1404_v42  ;;  %1950 = vmatpush.msk.msrb.mxu0 %vm62_vm0, %v1403_v43 }
  0x80   :  { %1949 = vmatmul.msk.f32.vlgmr.msra.gmra.mxu3 %vm58_vm1, %v1381_v6  ;;  %1947 = vmatmul.msk.f32.vlgmr.msra.gmra.mxu2 %vm58_vm1, %v1381_v6 }
  0x83   :  { %1945 = vmatmul.msk.f32.vlgmr.msra.gmra.mxu1 %vm58_vm1, %v1381_v6  ;;  %1943 = vmatmul.msk.f32.vlgmr.msra.gmra.mxu0 %vm58_vm1, %v1381_v6 }
  0x88   :  { %1957 = vmatmul.msk.f32.vlgmr.msrb.gmra.mxu3 %vm58_vm1, %v1381_v6  ;;  %1955 = vmatmul.msk.f32.vlgmr.msrb.gmra.mxu2 %vm58_vm1, %v1381_v6 }
  0x8b   :  { %1953 = vmatmul.msk.f32.vlgmr.msrb.gmra.mxu1 %vm58_vm1, %v1381_v6  ;;  %1951 = vmatmul.msk.f32.vlgmr.msrb.gmra.mxu0 %vm58_vm1, %v1381_v6 }
  0x90   :  { %v132_v44 = vpop.f32.mrf.mxu1  ;;  %v112_v45 = vpop.f32.mrf.mxu0 }
  0x91   :  { %v431_v46 = vrot.slane %v132_v44, 4 }
  0x93   :  { %v172_v47 = vpop.f32.mrf.mxu3  ;;  %v440_v48 = vsel %vm439_vm2, %v112_v45, %v431_v46  ;;  %v152_v49 = vpop.f32.mrf.mxu2 }
  0x94   :  { %v432_v50 = vrot.slane %v172_v47, 4  ;;  %456 = vst [vmem:[#allocation5] sm:$0xff] %v440_v48 }
  0x96   :  { %v441_v51 = vsel %vm439_vm2, %v152_v49, %v432_v50 }
  0x97   :  { %457 = vst [vmem:[#allocation5 + $0x8] sm:$0xff] %v441_v51 }
  0x98   :  { %v212_v52 = vpop.f32.mrf.mxu1  ;;  %v192_v53 = vpop.f32.mrf.mxu0 }
  0x99   :  { %v433_v54 = vrot.slane %v212_v52, 4 }
  0x9b   :  { %v252_v55 = vpop.f32.mrf.mxu3  ;;  %v442_v56 = vsel %vm439_vm2, %v192_v53, %v433_v54  ;;  %v232_v57 = vpop.f32.mrf.mxu2 }
  0x9c   :  { %v434_v58 = vrot.slane %v252_v55, 4  ;;  %458 = vst [vmem:[#allocation5 + $0x10] sm:$0xff] %v442_v56 }
  0x9e   :  { %v443_v59 = vsel %vm439_vm2, %v232_v57, %v434_v58 }
  0x9f   :  { %459 = vst [vmem:[#allocation5 + $0x18] sm:$0xff] %v443_v59 }
  0xa0   :  { %v292_v60 = vpop.f32.mrf.mxu1  ;;  %v272_v61 = vpop.f32.mrf.mxu0 }
  0xa1   :  { %v435_v62 = vrot.slane %v292_v60, 4 }
  0xa3   :  { %v332_v63 = vpop.f32.mrf.mxu3  ;;  %v444_v2 = vsel %vm439_vm2, %v272_v61, %v435_v62  ;;  %v312_v4 = vpop.f32.mrf.mxu2 }
  0xa4   :  { %v436_v5 = vrot.slane %v332_v63, 4  ;;  %460 = vst [vmem:[#allocation5 + $0x20] sm:$0xff] %v444_v2 }
  0xa6   :  { %v445_v7 = vsel %vm439_vm2, %v312_v4, %v436_v5 }
  0xa7   :  { %461 = vst [vmem:[#allocation5 + $0x28] sm:$0xff] %v445_v7 }
  0xa8   :  { %v372_v8 = vpop.f32.mrf.mxu1  ;;  %v352_v9 = vpop.f32.mrf.mxu0 }
  0xa9   :  { %v437_v10 = vrot.slane %v372_v8, 4 }
  0xab   :  { %v412_v11 = vpop.f32.mrf.mxu3  ;;  %v446_v12 = vsel %vm439_vm2, %v352_v9, %v437_v10  ;;  %v392_v15 = vpop.f32.mrf.mxu2 }
  0xac   :  { %v438_v16 = vrot.slane %v412_v11, 4  ;;  %462 = vst [vmem:[#allocation5 + $0x30] sm:$0xff] %v446_v12 }
  0xae   :  { %v447_v17 = vsel %vm439_vm2, %v392_v15, %v438_v16 }
  0xaf   :  { %463 = vst [vmem:[#allocation5 + $0x38] sm:$0xff] %v447_v17 }
  0xb0   :  { %v583_v18 = vpop.f32.mrf.mxu1  ;;  %v563_v19 = vpop.f32.mrf.mxu0 }
  0xb1   :  { %v882_v20 = vrot.slane %v583_v18, 4 }
  0xb3   :  { %v623_v21 = vpop.f32.mrf.mxu3  ;;  %v890_v0 = vsel %vm439_vm2, %v563_v19, %v882_v20  ;;  %v603_v13 = vpop.f32.mrf.mxu2 }
  0xb4   :  { %v883_v22 = vrot.slane %v623_v21, 4  ;;  %907 = vst [vmem:[#allocation5 + $0x40] sm:$0xff] %v890_v0 }
  0xb6   :  { %v891_v23 = vsel %vm439_vm2, %v603_v13, %v883_v22 }
  0xb7   :  { %908 = vst [vmem:[#allocation5 + $0x48] sm:$0xff] %v891_v23 }
  0xb8   :  { %v663_v24 = vpop.f32.mrf.mxu1  ;;  %v643_v25 = vpop.f32.mrf.mxu0 }
  0xb9   :  { %v884_v26 = vrot.slane %v663_v24, 4 }
  0xbb   :  { %v703_v1 = vpop.f32.mrf.mxu3  ;;  %v892_v14 = vsel %vm439_vm2, %v643_v25, %v884_v26  ;;  %v683_v27 = vpop.f32.mrf.mxu2 }
  0xbc   :  { %v885_v28 = vrot.slane %v703_v1, 4  ;;  %909 = vst [vmem:[#allocation5 + $0x50] sm:$0xff] %v892_v14 }
  0xbe   :  { %v893_v31 = vsel %vm439_vm2, %v683_v27, %v885_v28 }
  0xbf   :  { %910 = vst [vmem:[#allocation5 + $0x58] sm:$0xff] %v893_v31 }
  0xc0   :  { %v743_v32 = vpop.f32.mrf.mxu1  ;;  %v723_v3 = vpop.f32.mrf.mxu0 }
  0xc1   :  { %v886_v29 = vrot.slane %v743_v32, 4 }
  0xc3   :  { %v783_v33 = vpop.f32.mrf.mxu3  ;;  %v894_v34 = vsel %vm439_vm2, %v723_v3, %v886_v29  ;;  %v763_v35 = vpop.f32.mrf.mxu2 }
  0xc4   :  { %v887_v36 = vrot.slane %v783_v33, 4  ;;  %911 = vst [vmem:[#allocation5 + $0x60] sm:$0xff] %v894_v34 }
  0xc6   :  { %v895_v6 = vsel %vm439_vm2, %v763_v35, %v887_v36 }
  0xc7   :  { %912 = vst [vmem:[#allocation5 + $0x68] sm:$0xff] %v895_v6 }
  0xc8   :  { %v823_v30 = vpop.f32.mrf.mxu1  ;;  %v803_v37 = vpop.f32.mrf.mxu0 }
  0xc9   :  { %v888_v38 = vrot.slane %v823_v30, 4 }
  0xcb   :  { %v863_v39 = vpop.f32.mrf.mxu3  ;;  %v896_v40 = vsel %vm439_vm2, %v803_v37, %v888_v38  ;;  %v843_v41 = vpop.f32.mrf.mxu2 }
  0xcc   :  { %v889_v42 = vrot.slane %v863_v39, 4  ;;  %913 = vst [vmem:[#allocation5 + $0x70] sm:$0xff] %v896_v40 }
  0xce   :  { %v897_v43 = vsel %vm439_vm2, %v843_v41, %v889_v42 }
  0xcf   :  { %914 = vst [vmem:[#allocation5 + $0x78] sm:$0xff] %v897_v43 }
  0xd0   :  { %v1033_v44 = vpop.f32.mrf.mxu1  ;;  %v1013_v45 = vpop.f32.mrf.mxu0 }
  0xd1   :  { %v1332_v46 = vrot.slane %v1033_v44, 4 }
  0xd3   :  { %v1073_v47 = vpop.f32.mrf.mxu3  ;;  %v1340_v48 = vsel %vm439_vm2, %v1013_v45, %v1332_v46  ;;  %v1053_v49 = vpop.f32.mrf.mxu2 }
  0xd4   :  { %v1333_v50 = vrot.slane %v1073_v47, 4  ;;  %1357 = vst [vmem:[#allocation5 + $0x80] sm:$0xff] %v1340_v48 }
  0xd6   :  { %v1341_v51 = vsel %vm439_vm2, %v1053_v49, %v1333_v50 }
  0xd7   :  { %1358 = vst [vmem:[#allocation5 + $0x88] sm:$0xff] %v1341_v51 }
  0xd8   :  { %v1113_v52 = vpop.f32.mrf.mxu1  ;;  %v1093_v53 = vpop.f32.mrf.mxu0 }
  0xd9   :  { %v1334_v54 = vrot.slane %v1113_v52, 4 }
  0xdb   :  { %v1153_v55 = vpop.f32.mrf.mxu3  ;;  %v1342_v56 = vsel %vm439_vm2, %v1093_v53, %v1334_v54  ;;  %v1133_v57 = vpop.f32.mrf.mxu2 }
  0xdc   :  { %v1335_v58 = vrot.slane %v1153_v55, 4  ;;  %1359 = vst [vmem:[#allocation5 + $0x90] sm:$0xff] %v1342_v56 }
  0xde   :  { %v1343_v59 = vsel %vm439_vm2, %v1133_v57, %v1335_v58 }
  0xdf   :  { %1360 = vst [vmem:[#allocation5 + $0x98] sm:$0xff] %v1343_v59 }
  0xe0   :  { %v1193_v60 = vpop.f32.mrf.mxu1  ;;  %v1173_v61 = vpop.f32.mrf.mxu0 }
  0xe1   :  { %v1336_v62 = vrot.slane %v1193_v60, 4 }
  0xe3   :  { %v1233_v63 = vpop.f32.mrf.mxu3  ;;  %v1344_v2 = vsel %vm439_vm2, %v1173_v61, %v1336_v62  ;;  %v1213_v4 = vpop.f32.mrf.mxu2 }
  0xe4   :  { %v1337_v5 = vrot.slane %v1233_v63, 4  ;;  %1361 = vst [vmem:[#allocation5 + $0xa0] sm:$0xff] %v1344_v2 }
  0xe6   :  { %v1345_v7 = vsel %vm439_vm2, %v1213_v4, %v1337_v5 }
  0xe7   :  { %1362 = vst [vmem:[#allocation5 + $0xa8] sm:$0xff] %v1345_v7 }
  0xe8   :  { %v1273_v8 = vpop.f32.mrf.mxu1  ;;  %v1253_v9 = vpop.f32.mrf.mxu0 }
  0xe9   :  { %v1338_v10 = vrot.slane %v1273_v8, 4 }
  0xeb   :  { %v1313_v11 = vpop.f32.mrf.mxu3  ;;  %v1346_v12 = vsel %vm439_vm2, %v1253_v9, %v1338_v10  ;;  %v1293_v15 = vpop.f32.mrf.mxu2 }
  0xec   :  { %v1339_v16 = vrot.slane %v1313_v11, 4  ;;  %1363 = vst [vmem:[#allocation5 + $0xb0] sm:$0xff] %v1346_v12 }
  0xee   :  { %v1347_v17 = vsel %vm439_vm2, %v1293_v15, %v1339_v16 }
  0xef   :  { %1364 = vst [vmem:[#allocation5 + $0xb8] sm:$0xff] %v1347_v17 }
  0xf0   :  { %v1479_v18 = vpop.f32.mrf.mxu1  ;;  %v1459_v19 = vpop.f32.mrf.mxu0 }
  0xf1   :  { %v1778_v20 = vrot.slane %v1479_v18, 4 }
  0xf3   :  { %v1519_v21 = vpop.f32.mrf.mxu3  ;;  %v1786_v0 = vsel %vm439_vm2, %v1459_v19, %v1778_v20  ;;  %v1499_v13 = vpop.f32.mrf.mxu2 }
  0xf4   :  { %v1779_v22 = vrot.slane %v1519_v21, 4  ;;  %1803 = vst [vmem:[#allocation5 + $0xc0] sm:$0xff] %v1786_v0 }
  0xf6   :  { %v1787_v23 = vsel %vm439_vm2, %v1499_v13, %v1779_v22 }
  0xf7   :  { %1804 = vst [vmem:[#allocation5 + $0xc8] sm:$0xff] %v1787_v23 }
  0xf8   :  { %v1559_v24 = vpop.f32.mrf.mxu1  ;;  %v1539_v25 = vpop.f32.mrf.mxu0 }
  0xf9   :  { %v1780_v26 = vrot.slane %v1559_v24, 4 }
  0xfb   :  { %v1599_v1 = vpop.f32.mrf.mxu3  ;;  %v1788_v14 = vsel %vm439_vm2, %v1539_v25, %v1780_v26  ;;  %v1579_v27 = vpop.f32.mrf.mxu2 }
  0xfc   :  { %v1781_v28 = vrot.slane %v1599_v1, 4  ;;  %1805 = vst [vmem:[#allocation5 + $0xd0] sm:$0xff] %v1788_v14 }
  0xfe   :  { %v1789_v31 = vsel %vm439_vm2, %v1579_v27, %v1781_v28 }
  0xff   :  { %1806 = vst [vmem:[#allocation5 + $0xd8] sm:$0xff] %v1789_v31 }
 0x100   :  { %v1639_v32 = vpop.f32.mrf.mxu1  ;;  %v1619_v3 = vpop.f32.mrf.mxu0 }
 0x101   :  { %v1782_v29 = vrot.slane %v1639_v32, 4 }
 0x103   :  { %v1679_v33 = vpop.f32.mrf.mxu3  ;;  %v1790_v34 = vsel %vm439_vm2, %v1619_v3, %v1782_v29  ;;  %v1659_v35 = vpop.f32.mrf.mxu2 }
 0x104   :  { %v1783_v36 = vrot.slane %v1679_v33, 4  ;;  %1807 = vst [vmem:[#allocation5 + $0xe0] sm:$0xff] %v1790_v34 }
 0x106   :  { %v1791_v6 = vsel %vm439_vm2, %v1659_v35, %v1783_v36 }
 0x107   :  { %1808 = vst [vmem:[#allocation5 + $0xe8] sm:$0xff] %v1791_v6 }
 0x108   :  { %v1719_v30 = vpop.f32.mrf.mxu1  ;;  %v1699_v37 = vpop.f32.mrf.mxu0 }
 0x109   :  { %v1784_v38 = vrot.slane %v1719_v30, 4 }
 0x10b   :  { %v1759_v39 = vpop.f32.mrf.mxu3  ;;  %v1792_v40 = vsel %vm439_vm2, %v1699_v37, %v1784_v38  ;;  %v1739_v41 = vpop.f32.mrf.mxu2 }
 0x10c   :  { %v1785_v42 = vrot.slane %v1759_v39, 4  ;;  %1809 = vst [vmem:[#allocation5 + $0xf0] sm:$0xff] %v1792_v40 }
 0x10e   :  { %v1793_v43 = vsel %vm439_vm2, %v1739_v41, %v1785_v42 }
 0x10f   :  { %1810 = vst [vmem:[#allocation5 + $0xf8] sm:$0xff] %v1793_v43 }
 0x110   :  { %1823 = dma.vmem_to_hbm [thread:$0]  %s1816_s23, 4096, %s1818_s26, [#allocation4], %s2020_s27, %s2020_s27, %s2021_s28  }
 0x111   :  { %2014 = dma.done.wait [#allocation4], 4096  }
 0x112   :  { %2015 = vsyncadd [#allocation4], 4294963200 }
 0x113   :  { %1828 = vsyncpa [#allocation3], 1 }
 0x114   :  { %1829 = vsyncpa [#allocation4], 1 }

</bundles_post_ra>
